<compile_context>
chip_gen: v6e
topology: v6e:2x2x1
jax: 0.10.0
libtpu: 0.0.40
codegen_flags: <defaults>
</compile_context>

<pallas_src>
import jax
import jax.numpy as jnp
from jax.experimental import pallas as pl
from jax.experimental.pallas import tpu as pltpu


def controller_kernel(x_ref, w_ref, b_ref, o_ref):
    # x_ref: (g, 128, H) VMEM tile of the (reshaped) batch
    # w_ref: (1, 1, H)   VMEM fused weight row (W1 @ W2), resident across steps
    # b_ref: (1, 1)      SMEM fused scalar bias (b1 @ W2 + b2)
    # o_ref: (g, 128)    lane-dense output tile
    x = x_ref[...]
    w = w_ref[...]                                   # broadcasts over (g, 128)
    s = jnp.sum(x * w, axis=-1) + b_ref[0, 0]        # (g, 128) fused matvec
    # Numerically stable softplus: log(1 + exp(s)).
    o_ref[...] = jnp.maximum(s, 0.0) + jnp.log1p(jnp.exp(-jnp.abs(s)))


def controller_forward(x, w1, b1, w2, b2, *, tile_rows=8192):
    """softplus(linear2(linear1(x))), weights stored as (in_features, out_features)."""
    B, H = x.shape
    LANES = 128

    # --- algebraic fusion of the two activation-free linears (once, in JAX) ---
    w_eff = (w1 @ w2).reshape(1, 1, H).astype(jnp.float32)   # (H,20)@(20,1) -> (1,1,H)
    b_eff = (b1 @ w2 + b2).reshape(1, 1).astype(jnp.float32) # scalar bias
    x = x.astype(jnp.float32)

    # --- batch tiling: groups of 128 rows (lane-dense output), big tiles ---
    G = -(-B // LANES)                                # ceil(B / 128) groups
    g_tile = max(1, min(G, max(1, tile_rows // LANES)))
    G_pad = -(-G // g_tile) * g_tile                  # pad groups to tile multiple
    rows_pad = G_pad * LANES

    if rows_pad != B:                                 # ragged batch -> zero-pad rows
        x = jnp.pad(x, ((0, rows_pad - B), (0, 0)))
    x3 = x.reshape(G_pad, LANES, H)                   # free, contiguous reshape

    num_steps = G_pad // g_tile

    out = pl.pallas_call(
        controller_kernel,
        out_shape=jax.ShapeDtypeStruct((G_pad, LANES), jnp.float32),
        grid_spec=pltpu.PrefetchScalarGridSpec(
            num_scalar_prefetch=0,
            grid=(num_steps,),
            in_specs=[
                pl.BlockSpec((g_tile, LANES, H), lambda i: (i, 0, 0)),   # x stream
                pl.BlockSpec((1, 1, H), lambda i: (0, 0, 0)),            # fused weight
                pl.BlockSpec(memory_space=pltpu.MemorySpace.SMEM),       # fused bias
            ],
            out_specs=pl.BlockSpec((g_tile, LANES), lambda i: (i, 0)),
        ),
        compiler_params=pltpu.CompilerParams(
            dimension_semantics=("parallel",),
            vmem_limit_bytes=32 * 1024 * 1024,
        ),
        cost_estimate=pl.CostEstimate(
            flops=2 * rows_pad * H,
            transcendentals=2 * rows_pad,
            bytes_accessed=rows_pad * H * 4 + rows_pad * 4,
        ),
    )(x3, w_eff, b_eff)

    return out.reshape(rows_pad, 1)[:B]


def reference_forward(x, w1, b1, w2, b2):
    z = x @ w1 + b1
    s = z @ w2 + b2
    return jax.nn.softplus(s)


if __name__ == "__main__":
    key = jax.random.PRNGKey(0)
    k_x, k_w1, k_b1, k_w2, k_b2 = jax.random.split(key, 5)

    hidden_dim = 32
    # Parameters of Linear(hidden_dim, 20) and Linear(20, 1), stored as (in, out).
    w1 = jax.random.normal(k_w1, (hidden_dim, 20), dtype=jnp.float32) * 0.1
    b1 = jax.random.normal(k_b1, (1, 20), dtype=jnp.float32) * 0.1
    w2 = jax.random.normal(k_w2, (20, 1), dtype=jnp.float32) * 0.1
    b2 = jax.random.normal(k_b2, (1, 1), dtype=jnp.float32) * 0.1

    # Small case (typical module usage): single padded 128-row group.
    batch = 8
    x = jax.random.normal(k_x, (batch, hidden_dim), dtype=jnp.float32)
    out = jax.block_until_ready(controller_forward(x, w1, b1, w2, b2))
    ref = reference_forward(x, w1, b1, w2, b2)
    assert out.shape == (batch, 1)
    assert jnp.allclose(out, ref, atol=1e-5, rtol=1e-5), (out, ref)

    # Ragged batch (not a multiple of 128): exercises the padding path.
    batch_r = 200
    xr = jax.random.normal(k_x, (batch_r, hidden_dim), dtype=jnp.float32)
    out_r = jax.block_until_ready(controller_forward(xr, w1, b1, w2, b2))
    ref_r = reference_forward(xr, w1, b1, w2, b2)
    assert out_r.shape == (batch_r, 1)
    assert jnp.allclose(out_r, ref_r, atol=1e-5, rtol=1e-5)

    # Larger case: exercises the tiled, multi-grid-step "parallel" path
    # (16384 rows -> 2 steps of 8192 rows; both TensorCores on v7x).
    batch_big = 16384
    xb = jax.random.normal(k_x, (batch_big, hidden_dim), dtype=jnp.float32)
    out_b = jax.block_until_ready(controller_forward(xb, w1, b1, w2, b2))
    ref_b = reference_forward(xb, w1, b1, w2, b2)
    assert out_b.shape == (batch_big, 1)
    assert jnp.allclose(out_b, ref_b, atol=1e-5, rtol=1e-5)

    print("KERNEL_OK")
</pallas_src>

<mosaic_0001>
module attributes {stable_mosaic.version = 11 : i64} {
  func.func @controller_kernel(%arg0: i32, %arg1: memref<1x128x32xf32, #tpu.memory_space<vmem>>, %arg2: memref<1x1x32xf32, #tpu.memory_space<vmem>>, %arg3: memref<1x1xf32, #tpu.memory_space<smem>>, %arg4: memref<1x128xf32, #tpu.memory_space<vmem>>) attributes {dimension_semantics = [#tpu.dimension_semantics<parallel>], iteration_bounds = array<i64: 1>, scalar_prefetch = 0 : i64, scratch_operands = 0 : i64, tpu.core_type = #tpu.core_type<tc>, window_params = [{transform_indices = @transform_0, window_bounds = array<i64: 1, 128, 32>}, {pipeline_mode = #tpu.pipeline_mode<synchronous>, transform_indices = @transform_1, window_bounds = array<i64: 1, 1, 32>}, {transform_indices = @transform_2, window_bounds = array<i64: 1, 1>}, {transform_indices = @transform_3, window_bounds = array<i64: 1, 128>}]} {
    %c0 = arith.constant 0 : index
    %c0_0 = arith.constant 0 : index
    %c0_1 = arith.constant 0 : index
    %0 = vector.load %arg1[%c0, %c0_0, %c0_1] : memref<1x128x32xf32, #tpu.memory_space<vmem>>, vector<1x128x32xf32>
    %c0_2 = arith.constant 0 : index
    %c0_3 = arith.constant 0 : index
    %c0_4 = arith.constant 0 : index
    %1 = vector.load %arg2[%c0_2, %c0_3, %c0_4] : memref<1x1x32xf32, #tpu.memory_space<vmem>>, vector<1x1x32xf32>
    %2 = vector.broadcast %1 : vector<1x1x32xf32> to vector<1x128x32xf32>
    %3 = arith.mulf %0, %2 : vector<1x128x32xf32>
    %cst = arith.constant dense<0.000000e+00> : vector<1x128xf32>
    %4 = vector.multi_reduction <add>, %3, %cst [2] : vector<1x128x32xf32> to vector<1x128xf32>
    %c0_5 = arith.constant 0 : index
    %c0_6 = arith.constant 0 : index
    %5 = memref.load %arg3[%c0_5, %c0_6] : memref<1x1xf32, #tpu.memory_space<smem>>
    %6 = vector.broadcast %5 : f32 to vector<1x128xf32>
    %7 = arith.addf %4, %6 : vector<1x128xf32>
    %cst_7 = arith.constant 0.000000e+00 : f32
    %8 = vector.broadcast %cst_7 : f32 to vector<1x128xf32>
    %9 = arith.maximumf %7, %8 : vector<1x128xf32>
    %10 = math.absf %7 : vector<1x128xf32>
    %cst_8 = arith.constant 0.000000e+00 : f32
    %11 = vector.broadcast %cst_8 : f32 to vector<1x128xf32>
    %12 = arith.subf %11, %10 : vector<1x128xf32>
    %13 = math.exp %12 : vector<1x128xf32>
    %14 = math.log1p %13 : vector<1x128xf32>
    %15 = arith.addf %9, %14 : vector<1x128xf32>
    %c0_9 = arith.constant 0 : index
    %c0_10 = arith.constant 0 : index
    %16 = vector.load %arg4[%c0_9, %c0_10] : memref<1x128xf32, #tpu.memory_space<vmem>>, vector<1x128xf32>
    tpu.vector_store %arg4[%c0_9, %c0_10], %15 {strides = array<i32>} : memref<1x128xf32, #tpu.memory_space<vmem>>, vector<1x128xf32>,
    return
  }
  func.func @transform_0(%arg0: i32) -> (i32, i32, i32) {
    %c0_i32 = arith.constant 0 : i32
    %c0_i32_0 = arith.constant 0 : i32
    %c0_i32_1 = arith.constant 0 : i32
    return %arg0, %c0_i32, %c0_i32_0 : i32, i32, i32
  }
  func.func @transform_1(%arg0: i32) -> (i32, i32, i32) {
    %c0_i32 = arith.constant 0 : i32
    %c0_i32_0 = arith.constant 0 : i32
    %c0_i32_1 = arith.constant 0 : i32
    %c0_i32_2 = arith.constant 0 : i32
    return %c0_i32, %c0_i32_0, %c0_i32_1 : i32, i32, i32
  }
  func.func @transform_2(%arg0: i32) -> (i32, i32) {
    %c0_i32 = arith.constant 0 : i32
    %c0_i32_0 = arith.constant 0 : i32
    %c0_i32_1 = arith.constant 0 : i32
    return %c0_i32, %c0_i32_0 : i32, i32
  }
  func.func @transform_3(%arg0: i32) -> (i32, i32) {
    %c0_i32 = arith.constant 0 : i32
    %c0_i32_0 = arith.constant 0 : i32
    return %arg0, %c0_i32 : i32, i32
  }
}

</mosaic_0001>

<bundles_post_ra>
// kernel: tpu_custom_call.1
= control target key start
LH: loop header
LB: loop body
LE: loop exit
PB: predicated region body
PF: predicated region fallthrough
CT: control target
= control target key end

     0   :  { %vm55_vm0 = vcmask 261120   ;;  %s1090_s0 = inlined_call_operand.vmem [shape: f32[1,128,32], index: 0, kind: input, shape index: {}]   ;;  %s1091_s1 = inlined_call_operand.vmem [shape: f32[1,1,32], index: 1, kind: input, shape index: {}]   ;;  %s1092_s2 = inlined_call_operand.<no memory space> [shape: f32[1,1], index: 2, kind: input, shape index: {}]   ;;  %s1093_s3 = inlined_call_operand.hbm [shape: f32[1,128], index: 3, kind: output, shape index: {}]  }
   0x1   :  { %v18_v0 = vld [vmem:[%s1090_s0 + $0x10] sm:$0xff]  ;;  %v505_v1 = vld [vmem:[%s1091_s1] ss:$0 sm:$0xff]  ;;  %v19_v5 = vld [vmem:[%s1090_s0 + $0x18] sm:$0xff] }
   0x2   :  { %v16_v2 = vld [vmem:[%s1090_s0] sm:$0xff]  ;;  %v41_v3 = vmul.f32 %v505_v1, %v18_v0  ;;  %v17_v6 = vld [vmem:[%s1090_s0 + $0x8] sm:$0xff]  ;;  %v42_v7 = vmul.f32 %v505_v1, %v19_v5 }
   0x3   :  { %v39_v4 = vmul.f32 %v505_v1, %v16_v2  ;;  %v40_v8 = vmul.f32 %v505_v1, %v17_v6  ;;  %v21_v9 = vld [vmem:[%s1090_s0 + $0x28] sm:$0xff]  ;;  %v20_v10 = vld [vmem:[%s1090_s0 + $0x20] sm:$0xff] }
   0x4   :  { %v62_v11 = vsel %vm55_vm0, %v41_v3, 0.0  ;;  %v65_v13 = vsel %vm55_vm0, %v42_v7, 0.0  ;;  %v44_v15 = vmul.f32 %v505_v1, %v21_v9  ;;  %v43_v16 = vmul.f32 %v505_v1, %v20_v10 }
   0x5   :  { %v56_v12 = vsel %vm55_vm0, %v39_v4, 0.0  ;;  %63 = vadd.xlane.f32.xlu1 %v62_v11  ;;  %v59_v14 = vsel %vm55_vm0, %v40_v8, 0.0 }
   0x6   :  { %57 = vadd.xlane.f32.xlu0 %v56_v12 }
   0x7   :  { %9 = vsyncpa [#allocation4], 0  ;;  %v23_v17 = vld [vmem:[%s1090_s0 + $0x38] sm:$0xff]  ;;  %v22_v18 = vld [vmem:[%s1090_s0 + $0x30] sm:$0xff]  ;;  %v71_v19 = vsel %vm55_vm0, %v44_v15, 0.0  ;;  %v68_v20 = vsel %vm55_vm0, %v43_v16, 0.0  ;;  %v684_v52 = vstv %s1092_s2 }
   0x8   :  { %v46_v21 = vmul.f32 %v505_v1, %v23_v17  ;;  %v45_v22 = vmul.f32 %v505_v1, %v22_v18  ;;  %v25_v23 = vld [vmem:[%s1090_s0 + $0x48] sm:$0xff]  ;;  %v24_v24 = vld [vmem:[%s1090_s0 + $0x40] sm:$0xff]  ;;  %v27_v29 = vld [vmem:[%s1090_s0 + $0x58] sm:$0xff]  ;;  %vm389_vm5 = vcmask 130112   ;;  %vm396_vm6 = vcmask 195712   ;;  %s593_s2 = smov [#allocation3]  }
   0x9   :  { %66 = vadd.xlane.f32.xlu1 %v65_v13  ;;  %v48_v27 = vmul.f32 %v505_v1, %v25_v23  ;;  %v47_v28 = vmul.f32 %v505_v1, %v24_v24  ;;  %v26_v30 = vld [vmem:[%s1090_s0 + $0x50] sm:$0xff]  ;;  %v50_v33 = vmul.f32 %v505_v1, %v27_v29  ;;  %v29_v35 = vld [vmem:[%s1090_s0 + $0x68] sm:$0xff]  ;;  %v28_v36 = vld [vmem:[%s1090_s0 + $0x60] sm:$0xff]  ;;  %vm403_vm8 = vcmask 261312   ;;  %s497_s19 = sshll.u32 %s593_s2, 4  ;;  %s498_s19 = int_to_ptr.vmem [resolvable:$true] %s497_s19 }
   0xa   :  { %60 = vadd.xlane.f32.xlu0 %v59_v14  ;;  %v77_v25 = vsel %vm55_vm0, %v46_v21, 0.0  ;;  %v74_v26 = vsel %vm55_vm0, %v45_v22, 0.0  ;;  %v49_v34 = vmul.f32 %v505_v1, %v26_v30  ;;  %v52_v39 = vmul.f32 %v505_v1, %v29_v35  ;;  %v31_v41 = vld [vmem:[%s1090_s0 + $0x78] sm:$0xff]  ;;  %v30_v42 = vld [vmem:[%s1090_s0 + $0x70] sm:$0xff]  ;;  %s571_s20 = scalar_lea.vmem %s498_s19, 16  ;;  %s575_s21 = scalar_lea.vmem %s498_s19, 32 }
   0xb   :  { %v83_v31 = vsel %vm55_vm0, %v48_v27, 0.0  ;;  %v80_v32 = vsel %vm55_vm0, %v47_v28, 0.0  ;;  %v89_v37 = vsel %vm55_vm0, %v50_v33, 0.0  ;;  %v51_v40 = vmul.f32 %v505_v1, %v28_v36  ;;  %p572_p0 = scmp.ne.s32.totalorder %s498_s19, %s571_s20  ;;  %p576_p1 = scmp.lt.s32.totalorder %s498_s19, %s498_s19 }
   0xc   :  { %v86_v38 = vsel %vm55_vm0, %v49_v34, 0.0  ;;  %v95_v43 = vsel %vm55_vm0, %v52_v39, 0.0  ;;  %v54_v45 = vmul.f32 %v505_v1, %v31_v41  ;;  %v53_v46 = vmul.f32 %v505_v1, %v30_v42  ;;  %p577_p2 = scmp.lt.s32.totalorder %s575_s21, %s571_s20 }
   0xd   :  { %72 = vadd.xlane.f32.xlu1 %v71_v19  ;;  %v92_v44 = vsel %vm55_vm0, %v51_v40, 0.0  ;;  %vm410_vm9 = vcmask 326912   ;;  %vm417_vm12 = vcmask 392512   ;;  %vm424_vm13 = vcmask 458112  }
   0xe   :  { %69 = vadd.xlane.f32.xlu0 %v68_v20  ;;  %v101_v47 = vsel %vm55_vm0, %v54_v45, 0.0  ;;  %v98_v48 = vsel %vm55_vm0, %v53_v46, 0.0  ;;  %v378_v20 = vlaneseq  ;;  %vm431_vm0 = vcmask 523712   ;;  %p578_p3 = por %p577_p2, %p576_p1 }
  0x10   :  { %v725_v29 = vand.u32 127, %v378_v20  ;;  %p579_p4 = pnand %p578_p3, %p572_p0 }
  0x11   :  { %78 = vadd.xlane.f32.xlu1 %v77_v25 }
  0x12   :  { %75 = vadd.xlane.f32.xlu0 %v74_v26  ;;  %v739_v40 = vadd.s32 4294967272, %v725_v29  ;;  %v742_v41 = vadd.s32 4294967288, %v725_v29 }
  0x15   :  { %84 = vadd.xlane.f32.xlu1 %v83_v31 }
  0x16   :  { %81 = vadd.xlane.f32.xlu0 %v80_v32 }
  0x19   :  { %90 = vadd.xlane.f32.xlu1 %v89_v37  ;;  %v731_v37 = vshrl.u32 %v378_v20, 7  ;;  %v798_v20 = vadd.s32 4294967192, %v725_v29 }
  0x1a   :  { %87 = vadd.xlane.f32.xlu0 %v86_v38  ;;  %v734_v38 = vadd.s32 4294967280, %v725_v29 }
  0x1b   :  { %1099 = vst [vmem:[#allocation7_spill] sm:$0xff] %v798_v20 }
  0x1d   :  { %96 = vadd.xlane.f32.xlu1 %v95_v43 }
  0x1e   :  { %93 = vadd.xlane.f32.xlu0 %v92_v44  ;;  %v749_v44 = vadd.s32 4294967256, %v725_v29 }
  0x21   :  { %102 = vadd.xlane.f32.xlu1 %v101_v47 }
  0x22   :  { %99 = vadd.xlane.f32.xlu0 %v98_v48 }
  0x8e   :  { %v64_v50 = vpop.xlane.xlu1 %63 }
  0x8f   :  { %v58_v49 = vpop.xlane.xlu0 %57  ;;  %v693_v56 = vadd.f32 %v684_v52, %v64_v50 }
  0x90   :  { %v690_v54 = vadd.f32 %v684_v52, %v58_v49 }
  0x91   :  { %v140_v61 = vand.u32 2147483647, %v693_v56 }
  0x92   :  { %v67_v55 = vpop.xlane.xlu1 %66  ;;  %v138_v59 = vand.u32 2147483647, %v690_v54 }
  0x93   :  { %v61_v51 = vpop.xlane.xlu0 %60  ;;  %v698_v60 = vadd.f32 %v684_v52, %v67_v55  ;;  %v156_v4 = vsub.f32 0.0, %v140_v61 }
  0x94   :  { %v687_v53 = vadd.f32 %v684_v52, %v61_v51  ;;  %v154_v1 = vsub.f32 0.0, %v138_v59 }
  0x95   :  { %v141_v3 = vand.u32 2147483647, %v698_v60  ;;  %v174_v12 = vmul.f32 1.442695, %v156_v4  ;;  %v775_v4 = vadd.s32 4294967248, %v725_v29 }
  0x96   :  { %v139_v57 = vand.u32 2147483647, %v687_v53  ;;  %v73_v63 = vpop.xlane.xlu1 %72  ;;  %v170_v8 = vmul.f32 1.442695, %v154_v1  ;;  %v769_v1 = vadd.s32 4294967264, %v725_v29 }
  0x97   :  { %v70_v58 = vpop.xlane.xlu0 %69  ;;  %v706_v6 = vadd.f32 %v684_v52, %v73_v63  ;;  %v157_v10 = vsub.f32 0.0, %v141_v3  ;;  %v772_v3 = vadd.s32 4294967240, %v725_v29 }
  0x98   :  { %v155_v62 = vsub.f32 0.0, %v139_v57  ;;  %v702_v0 = vadd.f32 %v684_v52, %v70_v58 }
  0x99   :  { %v143_v13 = vand.u32 2147483647, %v706_v6  ;;  %v176_v17 = vmul.f32 1.442695, %v157_v10  ;;  %v784_v10 = vadd.s32 4294967232, %v725_v29 }
  0x9a   :  { %v172_v5 = vmul.f32 1.442695, %v155_v62  ;;  %v142_v7 = vand.u32 2147483647, %v702_v0  ;;  %v79_v9 = vpop.xlane.xlu1 %78 }
  0x9b   :  { %v76_v2 = vpop.xlane.xlu0 %75  ;;  %v714_v16 = vadd.f32 %v684_v52, %v79_v9  ;;  %v159_v21 = vsub.f32 0.0, %v143_v13  ;;  %v781_v9 = vadd.s32 4294967224, %v725_v29  ;;  %v789_v13 = vadd.s32 4294967208, %v725_v29 }
  0x9c   :  { %v710_v11 = vadd.f32 %v684_v52, %v76_v2  ;;  %507 = vpow2.f32 %v172_v5  ;;  %v158_v14 = vsub.f32 0.0, %v142_v7 }
  0x9d   :  { %509 = vpow2.f32 %v170_v8  ;;  %v145_v24 = vand.u32 2147483647, %v714_v16  ;;  %v180_v30 = vmul.f32 1.442695, %v159_v21  ;;  %1098 = vst [vmem:[#allocation6_spill] sm:$0xff] %v789_v13  ;;  %v801_v21 = vadd.s32 4294967200, %v725_v29 }
  0x9e   :  { %v144_v18 = vand.u32 2147483647, %v710_v11  ;;  %511 = vpow2.f32 %v174_v12  ;;  %v178_v22 = vmul.f32 1.442695, %v158_v14  ;;  %v85_v23 = vpop.xlane.xlu1 %84 }
  0x9f   :  { %v82_v15 = vpop.xlane.xlu0 %81  ;;  %513 = vpow2.f32 %v176_v17  ;;  %v722_v27 = vadd.f32 %v684_v52, %v85_v23  ;;  %v161_v32 = vsub.f32 0.0, %v145_v24  ;;  %1100 = vst [vmem:[#allocation8_spill] sm:$0xff] %v801_v21 }
  0xa0   :  { %v718_v19 = vadd.f32 %v684_v52, %v82_v15  ;;  %v160_v26 = vsub.f32 0.0, %v144_v18  ;;  %515 = vpow2.f32 %v178_v22  ;;  %v795_v18 = vadd.s32 4294967216, %v725_v29 }
  0xa1   :  { %v147_v35 = vand.u32 2147483647, %v722_v27  ;;  %517 = vpow2.f32 %v180_v30  ;;  %v184_v45 = vmul.f32 1.442695, %v161_v32 }
  0xa2   :  { %v146_v28 = vand.u32 2147483647, %v718_v19  ;;  %v91_v33 = vpop.xlane.xlu1 %90  ;;  %v182_v34 = vmul.f32 1.442695, %v160_v26 }
  0xa3   :  { %v88_v25 = vpop.xlane.xlu0 %87  ;;  %v745_v42 = vadd.f32 %v684_v52, %v91_v33  ;;  %v163_v47 = vsub.f32 0.0, %v147_v35 }
  0xa4   :  { %v728_v31 = vadd.f32 %v684_v52, %v88_v25  ;;  %v162_v36 = vsub.f32 0.0, %v146_v28  ;;  %519 = vpow2.f32 %v182_v34 }
  0xa5   :  { %v149_v59 = vand.u32 2147483647, %v745_v42  ;;  %521 = vpow2.f32 %v184_v45  ;;  %v188_v5 = vmul.f32 1.442695, %v163_v47 }
  0xa6   :  { %v148_v43 = vand.u32 2147483647, %v728_v31  ;;  %v186_v48 = vmul.f32 1.442695, %v162_v36  ;;  %v97_v2 = vpop.xlane.xlu1 %96 }
  0xa7   :  { %v165_v14 = vsub.f32 0.0, %v149_v59  ;;  %v792_v17 = vadd.f32 %v684_v52, %v97_v2  ;;  %v94_v47 = vpop.xlane.xlu0 %93 }
  0xa8   :  { %v164_v61 = vsub.f32 0.0, %v148_v43  ;;  %523 = vpow2.f32 %v186_v48 }
  0xa9   :  { %v736_v39 = vpop.eup %507  ;;  %v192_v33 = vmul.f32 1.442695, %v165_v14  ;;  %v151_v34 = vand.u32 2147483647, %v792_v17 }
  0xaa   :  { %v751_v46 = vpop.eup %509  ;;  %v211_v51 = vadd.f32 1.0, %v736_v39  ;;  %v190_v15 = vmul.f32 1.442695, %v164_v61  ;;  %v103_v26 = vpop.xlane.xlu1 %102  ;;  %v217_v45 = vand.u32 2147483647, %v736_v39 }
  0xab   :  { %v758_v55 = vpop.eup %511  ;;  %v202_v62 = vadd.f32 1.0, %v751_v46  ;;  %v167_v59 = vsub.f32 0.0, %v151_v34  ;;  %v205_v2 = vmul.f32 -0.5, %v751_v46  ;;  %v208_v43 = vand.u32 2147483647, %v751_v46 }
  0xac   :  { %v777_v7 = vpop.eup %513  ;;  %v220_v8 = vadd.f32 1.0, %v758_v55  ;;  %525 = vlog2.f32 %v211_v51  ;;  %v226_v36 = vand.u32 2147483647, %v758_v55  ;;  %vm873_vm3 = vcmp.lt.f32.partialorder %v217_v45, 0.0004427343  ;;  %v100_v51 = vpop.xlane.xlu0 %99 }
  0xad   :  { %v786_v12 = vpop.eup %515  ;;  %527 = vlog2.f32 %v202_v62  ;;  %v229_v22 = vadd.f32 1.0, %v777_v7  ;;  %v223_v62 = vmul.f32 -0.5, %v758_v55  ;;  %v196_v14 = vmul.f32 1.442695, %v167_v59 }
  0xae   :  { %529 = vpow2.f32 %v188_v5  ;;  %v238_v25 = vadd.f32 1.0, %v786_v12  ;;  %v813_v30 = vpop.eup %517  ;;  %v206_v32 = vadd.f32 1.0, %v205_v2  ;;  %vm852_vm1 = vcmp.lt.f32.partialorder %v208_v43, 0.0004427343 }
  0xaf   :  { %531 = vlog2.f32 %v220_v8  ;;  %v247_v5 = vadd.f32 1.0, %v813_v30  ;;  %v214_v8 = vmul.f32 -0.5, %v736_v39  ;;  %v224_v28 = vadd.f32 1.0, %v223_v62 }
  0xb0   :  { %533 = vpow2.f32 %v190_v15  ;;  %v835_v15 = vadd.f32 %v684_v52, %v94_v47  ;;  %vm859_vm2 = vcmp.lt.f32.partialorder %v226_v36, 0.0004427343  ;;  %v865_v43 = vadd.f32 %v684_v52, %v103_v26 }
  0xb1   :  { %535 = vlog2.f32 %v229_v22  ;;  %v828_v61 = vpop.eup %519  ;;  %v215_v23 = vadd.f32 1.0, %v214_v8  ;;  %v225_v50 = vmul.f32 %v758_v55, %v224_v28  ;;  %v207_v62 = vmul.f32 %v751_v46, %v206_v32 }
  0xb2   :  { %537 = vlog2.f32 %v238_v25  ;;  %v841_v35 = vpop.eup %521  ;;  %v232_v25 = vmul.f32 -0.5, %v777_v7  ;;  %v256_v59 = vadd.f32 1.0, %v828_v61  ;;  %v150_v57 = vand.u32 2147483647, %v835_v15  ;;  %1105 = vst [vmem:[#allocation9_spill] sm:$0xff] %v865_v43 }
  0xb3   :  { %539 = vpow2.f32 %v192_v33  ;;  %v265_v33 = vadd.f32 1.0, %v841_v35  ;;  %v216_v58 = vmul.f32 %v736_v39, %v215_v23  ;;  %v241_v55 = vmul.f32 -0.5, %v786_v12 }
  0xb4   :  { %541 = vlog2.f32 %v247_v5  ;;  %v233_v8 = vadd.f32 1.0, %v232_v25  ;;  %v166_v26 = vsub.f32 0.0, %v150_v57  ;;  %v244_v46 = vand.u32 2147483647, %v786_v12 }
  0xb5   :  { %v847_v47 = vpop.eup %523  ;;  %543 = vpow2.f32 %v196_v14  ;;  %v235_v14 = vand.u32 2147483647, %v777_v7  ;;  %v153_v57 = vand.u32 2147483647, %v865_v43  ;;  %v242_v13 = vadd.f32 1.0, %v241_v55 }
  0xb6   :  { %545 = vlog2.f32 %v256_v59  ;;  %v274_v2 = vadd.f32 1.0, %v847_v47  ;;  %v250_v59 = vmul.f32 -0.5, %v813_v30  ;;  %v194_v28 = vmul.f32 1.442695, %v166_v26 }
  0xb7   :  { %547 = vlog2.f32 %v265_v33  ;;  %vm883_vm4 = vcmp.lt.f32.partialorder %v235_v14, 0.0004427343  ;;  %v892_v33 = vadd.f32 %v684_v52, %v100_v51  ;;  %v169_v21 = vsub.f32 0.0, %v153_v57 }
  0xb8   :  { %549 = vlog2.f32 %v274_v2  ;;  %v251_v43 = vadd.f32 1.0, %v250_v59  ;;  %v1110_v52 = vmax.f32 %v687_v53, 0.0  ;;  %v259_v51 = vmul.f32 -0.5, %v828_v61 }
  0xb9   :  { %v526_v63 = vpop.eup %525  ;;  %551 = vpow2.f32 %v194_v28  ;;  %v200_v2 = vmul.f32 1.442695, %v169_v21  ;;  %vm906_vm7 = vcmp.lt.f32.partialorder %v244_v46, 0.0004427343  ;;  %v243_v21 = vmul.f32 %v786_v12, %v242_v13 }
  0xba   :  { %v528_v5 = vpop.eup %527  ;;  %v213_v48 = vmul.f32 0.6931472, %v526_v63  ;;  %v234_v63 = vmul.f32 %v777_v7, %v233_v8  ;;  %v253_v8 = vand.u32 2147483647, %v813_v30  ;;  %v1114_v46 = vsub.s32 %v742_v41, %v731_v37 }
  0xbb   :  { %v867_v22 = vpop.eup %529  ;;  %v204_v20 = vmul.f32 0.6931472, %v528_v5  ;;  %v277_v39 = vmul.f32 -0.5, %v847_v47 }
  0xbc   :  { %v532_v36 = vpop.eup %531  ;;  %v283_v23 = vadd.f32 1.0, %v867_v22  ;;  %v219_v5 = vsel %vm873_vm3, %v216_v58, %v213_v48  ;;  %v152_v58 = vand.u32 2147483647, %v892_v33  ;;  %vm933_vm10 = vcmp.lt.f32.partialorder %v253_v8, 0.0004427343 }
  0xbd   :  { %v878_v34 = vpop.eup %533  ;;  %v222_v45 = vmul.f32 0.6931472, %v532_v36  ;;  %v210_v36 = vsel %vm852_vm1, %v207_v62, %v204_v20  ;;  %v347_v48 = vadd.f32 %v219_v5, %v1110_v52  ;;  %v1113_v62 = vmax.f32 %v690_v54, 0.0 }
  0xbe   :  { %v536_v32 = vpop.eup %535  ;;  %v292_v14 = vadd.f32 1.0, %v878_v34  ;;  %553 = vlog2.f32 %v283_v23  ;;  %v168_v49 = vsub.f32 0.0, %v152_v58  ;;  %v262_v54 = vand.u32 2147483647, %v828_v61 }
  0xbf   :  { %v538_v7 = vpop.eup %537  ;;  %v228_v25 = vsel %vm859_vm2, %v225_v50, %v222_v45  ;;  %v231_v28 = vmul.f32 0.6931472, %v536_v32  ;;  %v346_v59 = vadd.f32 %v210_v36, %v1113_v62  ;;  %v268_v50 = vmul.f32 -0.5, %v841_v35 }
  0xc0   :  { %v896_v26 = vpop.eup %539  ;;  %v240_v55 = vmul.f32 0.6931472, %v538_v7  ;;  %555 = vlog2.f32 %v292_v14  ;;  %v198_v24 = vmul.f32 1.442695, %v168_v49  ;;  %v388_v23 = vrot.slane %v347_v48, %v1114_v46 }
  0xc1   :  { %v542_v20 = vpop.eup %541  ;;  %v301_v53 = vadd.f32 1.0, %v896_v26  ;;  %557 = vpow2.f32 %v200_v2  ;;  %v260_v32 = vadd.f32 1.0, %v259_v51  ;;  %v286_v45 = vmul.f32 -0.5, %v867_v22 }
  0xc2   :  { %v913_v5 = vpop.eup %543  ;;  %v1115_v14 = vmax.f32 %v693_v56, 0.0  ;;  %v237_v12 = vsel %vm883_vm4, %v234_v63, %v231_v28  ;;  %v249_v13 = vmul.f32 0.6931472, %v542_v20  ;;  %559 = vpow2.f32 %v198_v24 }
  0xc3   :  { %v546_v7 = vpop.eup %545  ;;  %v1116_v58 = vsub.s32 %v725_v29, %v731_v37  ;;  %v246_v41 = vsel %vm906_vm7, %v243_v21, %v240_v55  ;;  %561 = vlog2.f32 %v301_v53  ;;  %v319_v48 = vadd.f32 1.0, %v913_v5 }
  0xc4   :  { %v348_v36 = vadd.f32 %v228_v25, %v1115_v14  ;;  %v252_v51 = vmul.f32 %v813_v30, %v251_v43  ;;  %v271_v63 = vand.u32 2147483647, %v841_v35  ;;  %v548_v2 = vpop.eup %547  ;;  %v1119_v25 = vmax.f32 %v698_v60, 0.0 }
  0xc5   :  { %v383_v52 = vrot.slane %v346_v59, %v1116_v58  ;;  %v269_v49 = vadd.f32 1.0, %v268_v50  ;;  %v258_v20 = vmul.f32 0.6931472, %v546_v7  ;;  %v1120_v62 = vsub.s32 %v734_v38, %v731_v37  ;;  %v550_v60 = vpop.eup %549 }
  0xc6   :  { %v349_v28 = vadd.f32 %v237_v12, %v1119_v25  ;;  %v255_v43 = vsel %vm933_vm10, %v252_v51, %v249_v13  ;;  %v1121_v8 = vmax.f32 %v702_v0, 0.0  ;;  %vm949_vm11 = vcmp.lt.f32.partialorder %v262_v54, 0.0004427343  ;;  %v955_v24 = vpop.eup %551 }
  0xc7   :  { %v390_v57 = vsel %vm389_vm5, %v388_v23, %v383_v52  ;;  %v395_v30 = vrot.slane %v348_v36, %v1120_v62  ;;  %v261_v53 = vmul.f32 %v828_v61, %v260_v32  ;;  %v287_v21 = vadd.f32 1.0, %v286_v45 }
  0xc8   :  { %v350_v59 = vadd.f32 %v246_v41, %v1121_v8  ;;  %v289_v50 = vand.u32 2147483647, %v867_v22  ;;  %563 = vlog2.f32 %v319_v48  ;;  %v267_v46 = vmul.f32 0.6931472, %v548_v2 }
  0xc9   :  { %v397_v38 = vsel %vm396_vm6, %v395_v30, %v390_v57  ;;  %v278_v23 = vadd.f32 1.0, %v277_v39  ;;  %v280_v0 = vand.u32 2147483647, %v847_v47  ;;  %v1124_v54 = vsub.s32 %v739_v40, %v731_v37 }
  0xca   :  { %v1125_v14 = vmax.f32 %v706_v6, 0.0  ;;  %v264_v32 = vsel %vm949_vm11, %v261_v53, %v258_v20  ;;  %v310_v45 = vadd.f32 1.0, %v955_v24  ;;  %v1126_v12 = vsub.s32 %v769_v1, %v731_v37 }
  0xcb   :  { %v402_v7 = vrot.slane %v349_v28, %v1124_v54  ;;  %v554_v36 = vpop.eup %553  ;;  %v270_v58 = vmul.f32 %v841_v35, %v269_v49  ;;  %v276_v52 = vmul.f32 0.6931472, %v550_v60  ;;  %v295_v40 = vmul.f32 -0.5, %v878_v34 }
  0xcc   :  { %v351_v61 = vadd.f32 %v255_v43, %v1125_v14  ;;  %v409_v13 = vrot.slane %v350_v59, %v1126_v12  ;;  %vm973_vm14 = vcmp.lt.f32.partialorder %v271_v63, 0.0004427343  ;;  %v304_v48 = vmul.f32 -0.5, %v896_v26 }
  0xcd   :  { %v404_v41 = vsel %vm403_vm8, %v402_v7, %v397_v38  ;;  %565 = vlog2.f32 %v310_v45  ;;  %v556_v51 = vpop.eup %555  ;;  %v273_v1 = vsel %vm973_vm14, %v270_v58, %v267_v46  ;;  %v1129_v56 = vmax.f32 %v710_v11, 0.0 }
  0xce   :  { %vm982_vm15 = vcmp.lt.f32.partialorder %v289_v50, 0.0004427343  ;;  %v279_v2 = vmul.f32 %v847_v47, %v278_v23  ;;  %v987_v63 = vpop.eup %557  ;;  %v1132_v25 = vsub.s32 %v749_v44, %v731_v37  ;;  %v285_v57 = vmul.f32 0.6931472, %v554_v36 }
  0xcf   :  { %v352_v35 = vadd.f32 %v264_v32, %v1129_v56  ;;  %v288_v49 = vmul.f32 %v867_v22, %v287_v21  ;;  %vm993_vm1 = vcmp.lt.f32.partialorder %v280_v0, 0.0004427343  ;;  %v411_v11 = vsel %vm410_vm9, %v409_v13, %v404_v41  ;;  %v1001_v43 = vpop.eup %559 }
  0xd0   :  { %v416_v28 = vrot.slane %v351_v61, %v1132_v25  ;;  %vm438_vm2 = vcmask 589312   ;;  %v282_v47 = vsel %vm993_vm1, %v279_v2, %v276_v52  ;;  %v296_v62 = vadd.f32 1.0, %v295_v40  ;;  %v562_v60 = vpop.eup %561 }
  0xd1   :  { %v337_v30 = vadd.f32 1.0, %v987_v63  ;;  %v1135_v44 = vmax.f32 %v714_v16, 0.0  ;;  %v305_v22 = vadd.f32 1.0, %v304_v48  ;;  %v307_v59 = vand.u32 2147483647, %v896_v26 }
  0xd2   :  { %v298_v55 = vand.u32 2147483647, %v878_v34  ;;  %v1136_v53 = vsub.s32 %v775_v4, %v731_v37  ;;  %v294_v50 = vmul.f32 0.6931472, %v556_v51  ;;  %v328_v38 = vadd.f32 1.0, %v1001_v43 }
  0xd3   :  { %v353_v8 = vadd.f32 %v273_v1, %v1135_v44  ;;  %567 = vlog2.f32 %v337_v30  ;;  %v291_v46 = vsel %vm982_vm15, %v288_v49, %v285_v57  ;;  %v1137_v16 = vmax.f32 %v718_v19, 0.0 }
  0xd4   :  { %v423_v21 = vrot.slane %v352_v35, %v1136_v53  ;;  %v322_v0 = vmul.f32 -0.5, %v913_v5  ;;  %v313_v54 = vmul.f32 -0.5, %v955_v24  ;;  %v131_v7 = vmax.f32 %v722_v27, 0.0 }
  0xd5   :  { %v354_v23 = vadd.f32 %v282_v47, %v1137_v16  ;;  %vm445_vm3 = vcmask 654912   ;;  %v132_v4 = vmax.f32 %v728_v31, 0.0  ;;  %v297_v14 = vmul.f32 %v878_v34, %v296_v62  ;;  %v564_v12 = vpop.eup %563 }
  0xd6   :  { %569 = vlog2.f32 %v328_v38  ;;  %v1138_v61 = vsub.s32 %v772_v3, %v731_v37  ;;  %v418_v45 = vsel %vm417_vm12, %v416_v28, %v411_v11  ;;  %v303_v19 = vmul.f32 0.6931472, %v562_v60 }
  0xd7   :  { %vm1024_vm4 = vcmp.lt.f32.partialorder %v298_v55, 0.0004427343  ;;  %v355_v13 = vadd.f32 %v291_v46, %v131_v7  ;;  %v306_v27 = vmul.f32 %v896_v26, %v305_v22  ;;  %vm1029_vm5 = vcmp.lt.f32.partialorder %v307_v59, 0.0004427343  ;;  %v1150_v7 = vld [vmem:[#allocation8_spill] sm:$0xff] }
  0xd8   :  { %v430_v32 = vrot.slane %v353_v8, %v1138_v61  ;;  %vm452_vm6 = vcmask 720512   ;;  %v300_v3 = vsel %vm1024_vm4, %v297_v14, %v294_v50  ;;  %v425_v34 = vsel %vm424_vm13, %v423_v21, %v418_v45  ;;  %v1152_v14 = vld [vmem:[#allocation9_spill] sm:$0xff] }
  0xd9   :  { %v1143_v58 = vsub.s32 %v784_v10, %v731_v37  ;;  %v323_v40 = vadd.f32 1.0, %v322_v0  ;;  %v314_v41 = vadd.f32 1.0, %v313_v54  ;;  %v325_v6 = vand.u32 2147483647, %v913_v5 }
  0xda   :  { %v316_v26 = vand.u32 2147483647, %v955_v24  ;;  %v340_v48 = vmul.f32 -0.5, %v987_v63  ;;  %v475_v51 = vadd.s32 4294967184, %v725_v29  ;;  %v133_v1 = vmax.f32 %v745_v42, 0.0  ;;  %v566_v2 = vpop.eup %565 }
  0xdb   :  { %v437_v52 = vrot.slane %v354_v23, %v1143_v58  ;;  %v309_v56 = vsel %vm1029_vm5, %v306_v27, %v303_v19  ;;  %v356_v35 = vadd.f32 %v300_v3, %v132_v4  ;;  %v321_v39 = vmul.f32 0.6931472, %v564_v12  ;;  %v1153_v27 = vld [vmem:[#allocation7_spill] sm:$0xff] }
  0xdc   :  { %v1144_v10 = vsub.s32 %v781_v9, %v731_v37  ;;  %v432_v28 = vsel %vm431_vm0, %v430_v32, %v425_v34  ;;  %v134_v57 = vmax.f32 %v835_v15, 0.0  ;;  %v331_v49 = vmul.f32 -0.5, %v1001_v43 }
  0xdd   :  { %v439_v20 = vsel %vm438_vm2, %v437_v52, %v432_v28  ;;  %v324_v42 = vmul.f32 %v913_v5, %v323_v40  ;;  %v312_v11 = vmul.f32 0.6931472, %v566_v2  ;;  %v315_v47 = vmul.f32 %v955_v24, %v314_v41 }
  0xde   :  { %v444_v25 = vrot.slane %v355_v13, %v1144_v10  ;;  %v357_v62 = vadd.f32 %v309_v56, %v133_v1  ;;  %vm1055_vm7 = vcmp.lt.f32.partialorder %v325_v6, 0.0004427343  ;;  %vm317_vm8 = vcmp.lt.f32.partialorder %v316_v26, 0.0004427343 }
  0xdf   :  { %v341_v9 = vadd.f32 1.0, %v340_v48  ;;  %v1147_v44 = vsub.s32 %v795_v18, %v731_v37  ;;  %v327_v8 = vsel %vm1055_vm7, %v324_v42, %v321_v39  ;;  %v318_v22 = vsel %vm317_vm8, %v315_v47, %v312_v11  ;;  %v1148_v18 = vld [vmem:[#allocation6_spill] sm:$0xff] }
  0xe0   :  { %v343_v5 = vand.u32 2147483647, %v987_v63  ;;  %v135_v59 = vmax.f32 %v792_v17, 0.0  ;;  %v358_v24 = vadd.f32 %v318_v22, %v134_v57  ;;  %v332_v55 = vadd.f32 1.0, %v331_v49  ;;  %v568_v53 = vpop.eup %567 }
  0xe1   :  { %v451_v15 = vrot.slane %v356_v35, %v1147_v44  ;;  %v482_v60 = vadd.s32 4294967176, %v725_v29  ;;  %v446_v21 = vsel %vm445_vm3, %v444_v25, %v439_v20  ;;  %v334_v50 = vand.u32 2147483647, %v1001_v43 }
  0xe2   :  { %vm459_vm9 = vcmask 786112   ;;  %vm466_vm10 = vcmask 851712   ;;  %v1149_v38 = vsub.s32 %v1148_v18, %v731_v37  ;;  %v359_v16 = vadd.f32 %v327_v8, %v135_v59 }
  0xe3   :  { %v339_v23 = vmul.f32 0.6931472, %v568_v53  ;;  %v342_v0 = vmul.f32 %v987_v63, %v341_v9  ;;  %v570_v17 = vpop.eup %569  ;;  %v453_v54 = vsel %vm452_vm6, %v451_v15, %v446_v21  ;;  %v1151_v29 = vsub.s32 %v1150_v7, %v731_v37 }
  0xe4   :  { %v458_v46 = vrot.slane %v357_v62, %v1149_v38  ;;  %v137_v61 = vmax.f32 %v1152_v14, 0.0  ;;  %vm344_vm11 = vcmp.lt.f32.partialorder %v343_v5, 0.0004427343  ;;  %v330_v45 = vmul.f32 0.6931472, %v570_v17 }
  0xe5   :  { %v465_v4 = vrot.slane %v358_v24, %v1151_v29  ;;  %v345_v32 = vsel %vm344_vm11, %v342_v0, %v339_v23  ;;  %v333_v19 = vmul.f32 %v1001_v43, %v332_v55  ;;  %v485_v36 = vsub.s32 %v482_v60, %v731_v37 }
  0xe6   :  { %v361_v12 = vadd.f32 %v345_v32, %v137_v61  ;;  %v478_v13 = vsub.s32 %v475_v51, %v731_v37  ;;  %v136_v63 = vmax.f32 %v892_v33, 0.0  ;;  %vm335_vm12 = vcmp.lt.f32.partialorder %v334_v50, 0.0004427343 }
  0xe7   :  { %v1154_v31 = vsub.s32 %v1153_v27, %v731_v37  ;;  %v336_v34 = vsel %vm335_vm12, %v333_v19, %v330_v45  ;;  %v460_v58 = vsel %vm459_vm9, %v458_v46, %v453_v54  ;;  %vm473_vm13 = vcmask 917312  }
  0xe8   :  { %v360_v52 = vadd.f32 %v336_v34, %v136_v63  ;;  %v467_v40 = vsel %vm466_vm10, %v465_v4, %v460_v58  ;;  %vm480_vm14 = vcmask 982912   ;;  %v486_v43 = vrot.slane %v361_v12, %v485_v36 }
  0xe9   :  { %v472_v3 = vrot.slane %v359_v16, %v1154_v31  ;;  %vm487_vm15 = vcmask 1048512  }
  0xea   :  { %v479_v41 = vrot.slane %v360_v52, %v478_v13 }
  0xeb   :  { %v474_v6 = vsel %vm473_vm13, %v472_v3, %v467_v40 }
  0xec   :  { %v481_v33 = vsel %vm480_vm14, %v479_v41, %v474_v6 }
  0xed   :  { %v488_v26 = vsel %vm487_vm15, %v486_v43, %v481_v33 }
  0xee   :  { %490 = vst [vmem:[#allocation3] sm:$0x1] %v488_v26 }
  0xef   :  { %582 = shalt.err (!%p579_p4)
}
  0xf0   :  { %500 = dma.vmem_to_hbm [thread:$0]  %s498_s19, 16, %s1093_s3, [#allocation4]  }
  0xf1   :  { %591 = dma.done.wait [#allocation4], 16  }
  0xf2   :  { %592 = vsyncadd [#allocation4], 4294967280 }
  0xf3   :  { %504 = vsyncpa [#allocation4], 1 }

</bundles_post_ra>
